<compile_context>
chip_gen: v5e
topology: v5e:2x2
jax: 0.10.0
libtpu: 0.0.40
codegen_flags: <defaults>
</compile_context>

<pallas_src>
import functools

import jax
import jax.numpy as jnp
from jax.experimental import pallas as pl
from jax.experimental.pallas import tpu as pltpu


def convblock_kernel(p_ref, w_ref, b_ref, o_ref, *, G, Cpad):
    # ---- conv as one MXU matmul over im2col patches (bf16 in, f32 accumulate) ----
    acc = jnp.dot(p_ref[0], w_ref[...], preferred_element_type=jnp.float32)  # (4*G, Cpad)
    # ---- fused conv-bias + BN affine (folded into w/b in the wrapper) + ReLU ----
    y = jnp.maximum(acc + b_ref[...], 0.0)                                   # (4*G, Cpad)
    # ---- 2x2 / stride-2 maxpool ----
    # Patch rows were pre-ordered (i, j, ph, pw): the 4 members of each pooling window
    # live in 4 contiguous row groups of size G, so the pool is 3 dense vector maxes.
    y = y.reshape(4, G, Cpad)
    pooled = jnp.maximum(jnp.maximum(y[0], y[1]), jnp.maximum(y[2], y[3]))   # (G, Cpad)
    o_ref[0] = pooled.astype(o_ref.dtype)                                    # one dense store


def _pick_row_tile(H, W, K, bytes_per_elem=2, budget_bytes=2 << 20):
    # Largest even TH dividing H whose bf16 patch tile stays under ~2 MiB
    # (keeps double-buffered tiles comfortably inside all generations' scoped VMEM).
    for cand in range(H, 1, -2):
        if H % cand == 0 and cand * W * K * bytes_per_elem <= budget_bytes:
            return cand
    return 2


def conv_block_forward(x_nchw, w_oihw, bias, gamma, beta, run_mean, run_var, eps=1e-5):
    N, Cin, H, W = x_nchw.shape
    Cout = w_oihw.shape[0]
    assert H % 2 == 0 and W % 2 == 0, "MaxPool2d(2,2) path assumes even H and W"
    K = 9 * Cin
    Cpad = max(128, ((Cout + 127) // 128) * 128)
    TH = _pick_row_tile(H, W, K)
    T = H // TH
    G = (TH // 2) * (W // 2)

    # ---- glue (plain JAX): NCHW -> NHWC, pad=1, im2col, pool-friendly row order ----
    x = jnp.transpose(x_nchw, (0, 2, 3, 1)).astype(jnp.float32)        # (N,H,W,Cin)
    xp = jnp.pad(x, ((0, 0), (1, 1), (1, 1), (0, 0)))
    cols = [xp[:, kh:kh + H, kw:kw + W, :] for kh in range(3) for kw in range(3)]
    patches_hw = jnp.stack(cols, axis=3).reshape(N, H, W, K)           # (N,H,W,9*Cin)
    # (N,H,W,K) -> (N, T, TH//2, 2, W//2, 2, K) -> (N, T, 2, 2, TH//2, W//2, K):
    # row order per tile becomes (i, j, ph_local, pw), h = t*TH + 2*ph_local + i, w = 2*pw + j
    patches = jnp.transpose(
        patches_hw.reshape(N, T, TH // 2, 2, W // 2, 2, K),
        (0, 1, 3, 5, 2, 4, 6)).reshape(N, H * W, K).astype(jnp.bfloat16)

    # ---- fold BN (inference running stats) + conv bias into weights / one bias vec ----
    # TODO(synk): BatchNorm uses running stats (inference mode); training-mode batch
    # statistics would need a cross-batch mean/var reduction.
    scale = (gamma / jnp.sqrt(run_var + eps)).astype(jnp.float32)
    shift = (beta - run_mean * scale).astype(jnp.float32)
    wmat = jnp.transpose(w_oihw, (2, 3, 1, 0)).reshape(K, Cout).astype(jnp.float32)
    wmat = wmat * scale[None, :]
    bfused = bias.astype(jnp.float32) * scale + shift
    wpad = jnp.zeros((K, Cpad), jnp.float32).at[:, :Cout].set(wmat).astype(jnp.bfloat16)
    bpad = jnp.zeros((1, Cpad), jnp.float32).at[:, :Cout].set(bfused[None, :])

    kernel = functools.partial(convblock_kernel, G=G, Cpad=Cpad)
    flops = 2 * N * H * W * K * Cpad
    bytes_accessed = (patches.size * 2 + wpad.size * 2 + bpad.size * 4
                      + N * (H // 2) * (W // 2) * Cpad * 4)

    out_flat = pl.pallas_call(
        kernel,
        out_shape=jax.ShapeDtypeStruct((N, (H // 2) * (W // 2), Cpad), jnp.float32),
        grid_spec=pltpu.PrefetchScalarGridSpec(
            num_scalar_prefetch=0,
            grid=(N, T),
            in_specs=[
                pl.BlockSpec((1, TH * W, K), lambda n, t: (n, t, 0)),   # streamed activations
                pl.BlockSpec((K, Cpad), lambda n, t: (0, 0)),           # resident weights
                pl.BlockSpec((1, Cpad), lambda n, t: (0, 0)),           # resident fused bias
            ],
            out_specs=pl.BlockSpec((1, G, Cpad), lambda n, t: (n, t, 0)),
        ),
        compiler_params=pltpu.CompilerParams(
            dimension_semantics=("parallel", "parallel")),
        cost_estimate=pl.CostEstimate(
            flops=flops, transcendentals=0, bytes_accessed=bytes_accessed),
    )(patches, wpad, bpad)

    # back to PyTorch's NCHW convention (drop channel padding)
    out = out_flat.reshape(N, H // 2, W // 2, Cpad)[..., :Cout]
    return jnp.transpose(out, (0, 3, 1, 2))


def reference_forward(x_nchw, w_oihw, bias, gamma, beta, run_mean, run_var, eps=1e-5):
    x = jnp.transpose(x_nchw, (0, 2, 3, 1)).astype(jnp.float32)
    w_hwio = jnp.transpose(w_oihw, (2, 3, 1, 0)).astype(jnp.float32)
    conv = jax.lax.conv_general_dilated(
        x, w_hwio, window_strides=(1, 1), padding="SAME",
        dimension_numbers=("NHWC", "HWIO", "NHWC"))
    scale = gamma / jnp.sqrt(run_var + eps)
    shift = beta - run_mean * scale
    y = jnp.maximum((conv + bias) * scale + shift, 0.0)
    pooled = jax.lax.reduce_window(
        y, -jnp.inf, jax.lax.max,
        window_dimensions=(1, 2, 2, 1), window_strides=(1, 2, 2, 1), padding="VALID")
    return jnp.transpose(pooled, (0, 3, 1, 2))


if __name__ == "__main__":
    N, Cin, Cout, H, W = 2, 4, 8, 16, 16

    key = jax.random.PRNGKey(0)
    kx, kw, kb, kg, kbe, km, kv = jax.random.split(key, 7)

    x = jax.random.normal(kx, (N, Cin, H, W), dtype=jnp.float32)
    w_conv = 0.1 * jax.random.normal(kw, (Cout, Cin, 3, 3), dtype=jnp.float32)
    b_conv = 0.1 * jax.random.normal(kb, (Cout,), dtype=jnp.float32)
    gamma = 1.0 + 0.1 * jax.random.normal(kg, (Cout,), dtype=jnp.float32)
    beta = 0.1 * jax.random.normal(kbe, (Cout,), dtype=jnp.float32)
    run_mean = 0.1 * jax.random.normal(km, (Cout,), dtype=jnp.float32)
    run_var = 0.5 + jnp.abs(jax.random.normal(kv, (Cout,), dtype=jnp.float32))

    out = conv_block_forward(x, w_conv, b_conv, gamma, beta, run_mean, run_var)
    out = jax.block_until_ready(out)

    ref = reference_forward(x, w_conv, b_conv, gamma, beta, run_mean, run_var)
    assert out.shape == (N, Cout, H // 2, W // 2), out.shape
    assert jnp.allclose(out, ref, atol=3e-2, rtol=3e-2), float(jnp.max(jnp.abs(out - ref)))

    print("KERNEL_OK")
</pallas_src>

<mosaic_0001>
module attributes {stable_mosaic.version = 11 : i64} {
  func.func @convblock_kernel(%arg0: i32, %arg1: i32, %arg2: memref<1x256x36xbf16, #tpu.memory_space<vmem>>, %arg3: memref<36x128xbf16, #tpu.memory_space<vmem>>, %arg4: memref<1x128xf32, #tpu.memory_space<vmem>>, %arg5: memref<1x64x128xf32, #tpu.memory_space<vmem>>) attributes {dimension_semantics = [#tpu.dimension_semantics<parallel>, #tpu.dimension_semantics<parallel>], iteration_bounds = array<i64: 2, 1>, scalar_prefetch = 0 : i64, scratch_operands = 0 : i64, tpu.core_type = #tpu.core_type<tc>, window_params = [{transform_indices = @transform_0, window_bounds = array<i64: 1, 256, 36>}, {pipeline_mode = #tpu.pipeline_mode<synchronous>, transform_indices = @transform_1, window_bounds = array<i64: 36, 128>}, {pipeline_mode = #tpu.pipeline_mode<synchronous>, transform_indices = @transform_2, window_bounds = array<i64: 1, 128>}, {transform_indices = @transform_3, window_bounds = array<i64: 1, 64, 128>}]} {
    %c0 = arith.constant 0 : index
    %c0_0 = arith.constant 0 : index
    %c0_1 = arith.constant 0 : index
    %0 = vector.load %arg2[%c0, %c0_0, %c0_1] : memref<1x256x36xbf16, #tpu.memory_space<vmem>>, vector<1x256x36xbf16>
    %1 = vector.shape_cast %0 : vector<1x256x36xbf16> to vector<256x36xbf16>
    %c0_2 = arith.constant 0 : index
    %c0_3 = arith.constant 0 : index
    %2 = vector.load %arg3[%c0_2, %c0_3] : memref<36x128xbf16, #tpu.memory_space<vmem>>, vector<36x128xbf16>
    %cst = arith.constant dense<0.000000e+00> : vector<256x128xf32>
    %3 = tpu.matmul %1, %2, %cst {dimension_numbers = #tpu.dot_dimension_numbers<[1], [0], [0], [1], [0, 0, 1, 1], [], []>} : vector<256x36xbf16>, vector<36x128xbf16>, vector<256x128xf32> -> vector<256x128xf32>
    %c0_4 = arith.constant 0 : index
    %c0_5 = arith.constant 0 : index
    %4 = vector.load %arg4[%c0_4, %c0_5] : memref<1x128xf32, #tpu.memory_space<vmem>>, vector<1x128xf32>
    %5 = vector.broadcast %4 : vector<1x128xf32> to vector<256x128xf32>
    %6 = arith.addf %3, %5 : vector<256x128xf32>
    %cst_6 = arith.constant 0.000000e+00 : f32
    %7 = vector.broadcast %cst_6 : f32 to vector<256x128xf32>
    %8 = arith.maximumf %6, %7 : vector<256x128xf32>
    %9 = vector.shape_cast %8 : vector<256x128xf32> to vector<4x64x128xf32>
    %10 = vector.extract_strided_slice %9 {offsets = [0, 0, 0], sizes = [1, 64, 128], strides = [1, 1, 1]} : vector<4x64x128xf32> to vector<1x64x128xf32>
    %11 = vector.shape_cast %10 : vector<1x64x128xf32> to vector<64x128xf32>
    %12 = vector.extract_strided_slice %9 {offsets = [1, 0, 0], sizes = [1, 64, 128], strides = [1, 1, 1]} : vector<4x64x128xf32> to vector<1x64x128xf32>
    %13 = vector.shape_cast %12 : vector<1x64x128xf32> to vector<64x128xf32>
    %14 = arith.maximumf %11, %13 : vector<64x128xf32>
    %15 = vector.extract_strided_slice %9 {offsets = [2, 0, 0], sizes = [1, 64, 128], strides = [1, 1, 1]} : vector<4x64x128xf32> to vector<1x64x128xf32>
    %16 = vector.shape_cast %15 : vector<1x64x128xf32> to vector<64x128xf32>
    %17 = vector.extract_strided_slice %9 {offsets = [3, 0, 0], sizes = [1, 64, 128], strides = [1, 1, 1]} : vector<4x64x128xf32> to vector<1x64x128xf32>
    %18 = vector.shape_cast %17 : vector<1x64x128xf32> to vector<64x128xf32>
    %19 = arith.maximumf %16, %18 : vector<64x128xf32>
    %20 = arith.maximumf %14, %19 : vector<64x128xf32>
    %c0_7 = arith.constant 0 : index
    %c0_8 = arith.constant 0 : index
    %c0_9 = arith.constant 0 : index
    %21 = vector.load %arg5[%c0_7, %c0_8, %c0_9] : memref<1x64x128xf32, #tpu.memory_space<vmem>>, vector<1x64x128xf32>
    %22 = vector.shape_cast %21 : vector<1x64x128xf32> to vector<64x128xf32>
    %23 = vector.shape_cast %20 : vector<64x128xf32> to vector<1x64x128xf32>
    tpu.vector_store %arg5[%c0_7, %c0_8, %c0_9], %23 {strides = array<i32>} : memref<1x64x128xf32, #tpu.memory_space<vmem>>, vector<1x64x128xf32>,
    return
  }
  func.func @transform_0(%arg0: i32, %arg1: i32) -> (i32, i32, i32) {
    %c0_i32 = arith.constant 0 : i32
    %c0_i32_0 = arith.constant 0 : i32
    return %arg0, %arg1, %c0_i32 : i32, i32, i32
  }
  func.func @transform_1(%arg0: i32, %arg1: i32) -> (i32, i32) {
    %c0_i32 = arith.constant 0 : i32
    %c0_i32_0 = arith.constant 0 : i32
    %c0_i32_1 = arith.constant 0 : i32
    return %c0_i32, %c0_i32_0 : i32, i32
  }
  func.func @transform_2(%arg0: i32, %arg1: i32) -> (i32, i32) {
    %c0_i32 = arith.constant 0 : i32
    %c0_i32_0 = arith.constant 0 : i32
    %c0_i32_1 = arith.constant 0 : i32
    return %c0_i32, %c0_i32_0 : i32, i32
  }
  func.func @transform_3(%arg0: i32, %arg1: i32) -> (i32, i32, i32) {
    %c0_i32 = arith.constant 0 : i32
    %c0_i32_0 = arith.constant 0 : i32
    return %arg0, %arg1, %c0_i32 : i32, i32, i32
  }
}

</mosaic_0001>

<bundles_post_ra>
// kernel: tpu_custom_call.1
= control target key start
LH: loop header
LB: loop body
LE: loop exit
PB: predicated region body
PF: predicated region fallthrough
CT: control target
= control target key end

     0   :  { %8 = vsyncpa [#allocation3], 0  ;;  %s1122_s0 = inlined_call_operand.vmem [shape: bf16[2,256,36], index: 0, kind: input, shape index: {}]   ;;  %s1123_s1 = inlined_call_operand.vmem [shape: bf16[36,128], index: 1, kind: input, shape index: {}]   ;;  %s1124_s2 = inlined_call_operand.vmem [shape: f32[1,128], index: 2, kind: input, shape index: {}]   ;;  %s1125_s3 = inlined_call_operand.hbm [shape: f32[2,64,128], index: 3, kind: output, shape index: {}]  }
   0x1   :  { %10 = vsyncpa [#allocation3 + $0x1], 0  ;;  %s930_s12 = smov 0   ;;  %s932_s13 = smov 0  }
   0x2   :  { %s934_s14 = smov 0   ;;  %s936_s15 = smov 0  }
   0x3   :  { %s938_s16 = smov 0   ;;  %s940_s17 = smov 0  }
   0x4 LB: > { %s640_s18 = sadd.s32 4294967295, %s906_s17   ;;  %s641_s19 = sadd.s32 4294967294, %s906_s17   ;;  %s906_s17 = sphi %s940_s17, %s16_s17   ;;  %s902_s16 = sphi %s938_s16, %s1132_s16   ;;  %s898_s15 = sphi %s936_s15, %s1131_s15   ;;  %s894_s14 = sphi %s934_s14, %s1130_s14   ;;  %s890_s13 = sphi %s932_s13, %s1129_s13   ;;  %s886_s12 = sphi %s930_s12, %s1128_s12  }
   0x5   : > { %s28_s20 = sadd.s32 1, %s902_s16  ;;  %s107_s21 = sadd.s32 1, %s894_s14 }
   0x6   : > { %p30_p0 = scmp.ge.s32.totalorder %s28_s20, 2  ;;  %p117_p1 = scmp.ne.s32.totalorder %s894_s14, %s890_s13 }
   0x7   : > { %p118_p2 = scmp.eq.s32.totalorder %s640_s18, 1  ;;  %p123_p3 = scmp.ne.s32.totalorder %s890_s13, %s886_s12 }
   0x8   : > { %s1134_s20 = smov (%p30_p0, %s28_s20), 0  ;;  %p124_p5 = scmp.eq.s32.totalorder %s641_s19, 1 }
   0x9   : > { %p970_p4 = por %p118_p2, %p117_p1  ;;  %s102_s23 = ssub.s32 %s902_s16, %s1134_s20 }
   0xa   : > { %p644_p6 = scmp.ge.s32.totalorder %s906_s17, 1  ;;  %p105_p7 = scmp.eq.s32.totalorder %s102_s23, 0 }
   0xb   : > { %p977_p8 = por %p124_p5, %p123_p3  ;;  %p161_p9 = scmp.lt.s32.totalorder %s906_s17, 3 }
   0xc   : > { %s983_s25 = scalar_select %p105_p7, %s894_s14, %s107_s21  }
   0xd   : > { %p162_p10 = pnand %p644_p6, %p161_p9 }
   0xe   : > { %p190_p11 = scmp.lt.s32.totalorder (!%p162_p10), %s898_s15, 1  ;;  %s186_s18 = sand.u32 (!%p162_p10), 1, %s890_s13  }
   0xf   : > { %165 = sbr.rel (%p162_p10) target bundleno = 238 (0xee), region = 32  ;;  %s645_s19 = sshll.u32 (!%p162_p10), %s186_s18, 6 }
  0x10   : > { %s1047_s21 = scalar_lea.vmem (!%p162_p10), [#allocation2], %s645_s19  ;;  %s760_s23 = sshll.u32 (!%p162_p10), %s898_s15, 6 }
  0x11   : > { %s544_s30 = scalar_lea.sflag (!%p162_p10), [#allocation3], %s186_s18  ;;  %s848_s8 = scalar_lea.hbm (!%p162_p10), %s1125_s3, 128 }
  0x14   : > { %v237_v0 = vld [vmem:[%s1123_s1 + $0x10] sm:$0x3]  ;;  %vm386_vm0 = vcmask 1041408   ;;  %s191_s28 = scalar_select %p190_p11, %s898_s15, 1  ;;  %v759_v4 = vld [vmem:[%s1123_s1 + $0x8] sm:$0xff]  ;;  %v758_v5 = vld [vmem:[%s1123_s1] sm:$0xff] }
  0x15   : > { %v331_v1 = vunpack.c.l.b16 %v237_v0  ;;  %vm337_vm1 = vcmask 293888   ;;  %v1036_v22 = vld [vmem:[%s1124_s2] ss:$0 sm:$0xff]  ;;  %s558_s15 = sshll.u32 %s1047_s21, 4  ;;  %s559_s15 = int_to_ptr.vmem [resolvable:$true] %s558_s15 }
  0x16   : > { %s741_s4 = sshll.u32 %s191_s28, 7  ;;  %s557_s28 = scalar_lea.hbm %s1125_s3, %s760_s23 }
  0x17   : > { %v334_v2 = vpack.c.b16 %v331_v1, %v331_v1  ;;  %s999_s9 = scalar_lea.vmem %s1122_s0, %s741_s4  ;;  %s560_s29 = sshll.u32 %s557_s28, 4  ;;  %s561_s29 = int_to_ptr.hbm [resolvable:$true] %s560_s29 }
  0x18   : > { %v742_v6 = vld [vmem:[%s999_s9] sm:$0xff]  ;;  %v743_v10 = vld [vmem:[%s999_s9 + $0x8] sm:$0xff]  ;;  %v744_v14 = vld [vmem:[%s999_s9 + $0x10] sm:$0xff]  ;;  %s842_s4 = sshra.s32 %s561_s29, 4  ;;  %s843_s4 = int_to_ptr.hbm [resolvable:$true] %s842_s4 }
  0x19   : > { %v388_v3 = vsel %vm386_vm0, %v334_v2, 0  ;;  %v746_v7 = vld [vmem:[%s999_s9 + $0x20] sm:$0xff]  ;;  %v747_v11 = vld [vmem:[%s999_s9 + $0x28] sm:$0xff]  ;;  %v748_v15 = vld [vmem:[%s999_s9 + $0x30] sm:$0xff]  ;;  %s844_s5 = scalar_lea.hbm %s843_s4, 64  ;;  %p849_p1 = scmp.lt.s32.totalorder %s843_s4, %s1125_s3 }
  0x1a   : > { %395 = vmatpush.bf16.msra.mxu0 %v388_v3  ;;  %761 = vmatpush.bf16.msra.mxu1 %v388_v3  ;;  %v750_v8 = vld [vmem:[%s999_s9 + $0x40] sm:$0xff]  ;;  %v751_v12 = vld [vmem:[%s999_s9 + $0x48] sm:$0xff]  ;;  %v752_v16 = vld [vmem:[%s999_s9 + $0x50] sm:$0xff]  ;;  %p845_p12 = scmp.ne.s32.totalorder %s843_s4, %s844_s5  ;;  %p850_p2 = scmp.lt.s32.totalorder %s848_s8, %s844_s5 }
  0x1b   : > { %762 = vmatpush.bf16.msra.mxu2 %v388_v3  ;;  %763 = vmatpush.bf16.msra.mxu3 %v388_v3  ;;  %v754_v9 = vld [vmem:[%s999_s9 + $0x60] sm:$0xff]  ;;  %v755_v13 = vld [vmem:[%s999_s9 + $0x68] sm:$0xff]  ;;  %v756_v17 = vld [vmem:[%s999_s9 + $0x70] sm:$0xff] }
  0x1c   : > { %v745_v18 = vld [vmem:[%s999_s9 + $0x18] sm:$0xff]  ;;  %p846_p13 = pnand %p845_p12, %p970_p4  ;;  %p851_p3 = por %p850_p2, %p849_p1 }
  0x1d   : > { %v749_v19 = vld [vmem:[%s999_s9 + $0x38] sm:$0xff] }
  0x1e   : > { %396 = vmatpush.bf16.msra.mxu0 %v759_v4  ;;  %764 = vmatpush.bf16.msra.mxu1 %v759_v4  ;;  %v753_v20 = vld [vmem:[%s999_s9 + $0x58] sm:$0xff]  ;;  %p847_p0 = pneg %p846_p13 }
  0x1f   : > { %765 = vmatpush.bf16.msra.mxu2 %v759_v4  ;;  %766 = vmatpush.bf16.msra.mxu3 %v759_v4  ;;  %v757_v21 = vld [vmem:[%s999_s9 + $0x78] sm:$0xff] }
  0x20   : > { %p852_p5 = pnand %p851_p3, %p847_p0 }
  0x22   : > { %397 = vmatpush.bf16.msra.mxu0 %v758_v5  ;;  %767 = vmatpush.bf16.msra.mxu1 %v758_v5 }
  0x23   : > { %768 = vmatpush.bf16.msra.mxu2 %v758_v5  ;;  %769 = vmatpush.bf16.msra.mxu3 %v758_v5 }
  0x25   : > { %720 = vmatmul.msk.bf16.vlgmr.msra.gmra.mxu0 %vm337_vm1, %v742_v6  ;;  %724 = vmatmul.msk.bf16.vlgmr.msra.gmra.mxu1 %vm337_vm1, %v746_v7 }
  0x26   : > { %728 = vmatmul.msk.bf16.vlgmr.msra.gmra.mxu2 %vm337_vm1, %v750_v8  ;;  %732 = vmatmul.msk.bf16.vlgmr.msra.gmra.mxu3 %vm337_vm1, %v754_v9 }
  0x35   : > { %721 = vmatmul.msk.bf16.gmra.mxu0 %vm337_vm1, %v743_v10  ;;  %725 = vmatmul.msk.bf16.gmra.mxu1 %vm337_vm1, %v747_v11 }
  0x36   : > { %729 = vmatmul.msk.bf16.gmra.mxu2 %vm337_vm1, %v751_v12  ;;  %733 = vmatmul.msk.bf16.gmra.mxu3 %vm337_vm1, %v755_v13 }
  0x45   : > { %722 = vmatmul.msk.bf16.gmra.mxu0 %vm337_vm1, %v744_v14  ;;  %726 = vmatmul.msk.bf16.gmra.mxu1 %vm337_vm1, %v748_v15 }
  0x46   : > { %730 = vmatmul.msk.bf16.gmra.mxu2 %vm337_vm1, %v752_v16  ;;  %734 = vmatmul.msk.bf16.gmra.mxu3 %vm337_vm1, %v756_v17 }
  0x55   : > { %723 = vmatmul.msk.bf16.gmra.mxu0 %vm337_vm1, %v745_v18  ;;  %727 = vmatmul.msk.bf16.gmra.mxu1 %vm337_vm1, %v749_v19 }
  0x56   : > { %731 = vmatmul.msk.bf16.gmra.mxu2 %vm337_vm1, %v753_v20  ;;  %735 = vmatmul.msk.bf16.gmra.mxu3 %vm337_vm1, %v757_v21 }
  0xa2   : > { %v399_v23 = vpop.f32.mrf.mxu0  ;;  %v419_v24 = vpop.f32.mrf.mxu1 }
  0xa3   : > { %v400_v25 = vadd.f32 %v1036_v22, %v399_v23  ;;  %v420_v26 = vadd.f32 %v1036_v22, %v419_v24 }
  0xa5   : > { %v479_v27 = vmax.f32 %v400_v25, 0.0  ;;  %v487_v28 = vmax.f32 %v420_v26, 0.0 }
  0xa7   : > { %v511_v35 = vmax.f32 %v479_v27, %v487_v28 }
  0xa9   : > { %v439_v29 = vpop.f32.mrf.mxu2  ;;  %v459_v30 = vpop.f32.mrf.mxu3 }
  0xaa   : > { %v440_v31 = vadd.f32 %v1036_v22, %v439_v29  ;;  %v460_v32 = vadd.f32 %v1036_v22, %v459_v30  ;;  %v401_v33 = vpop.f32.mrf.mxu0  ;;  %v421_v34 = vpop.f32.mrf.mxu1 }
  0xab   : > { %v402_v39 = vadd.f32 %v1036_v22, %v401_v33  ;;  %v422_v40 = vadd.f32 %v1036_v22, %v421_v34 }
  0xac   : > { %v495_v36 = vmax.f32 %v440_v31, 0.0  ;;  %v503_v37 = vmax.f32 %v460_v32, 0.0 }
  0xad   : > { %v480_v44 = vmax.f32 %v402_v39, 0.0  ;;  %v488_v45 = vmax.f32 %v422_v40, 0.0 }
  0xae   : > { %v519_v38 = vmax.f32 %v495_v36, %v503_v37 }
  0xaf   : > { %v512_v54 = vmax.f32 %v480_v44, %v488_v45 }
  0xb0   : > { %v527_v41 = vmax.f32 %v511_v35, %v519_v38 }
  0xb1   : > { %v441_v42 = vpop.f32.mrf.mxu2  ;;  %v461_v43 = vpop.f32.mrf.mxu3 }
  0xb2   : > { %535 = vst [vmem:[%s1047_s21] sm:$0xff] %v527_v41  ;;  %v442_v46 = vadd.f32 %v1036_v22, %v441_v42  ;;  %v462_v47 = vadd.f32 %v1036_v22, %v461_v43  ;;  %v404_v48 = vpop.f32.mrf.mxu0  ;;  %v424_v49 = vpop.f32.mrf.mxu1 }
  0xb3   : > { %v405_v52 = vadd.f32 %v1036_v22, %v404_v48  ;;  %v425_v53 = vadd.f32 %v1036_v22, %v424_v49 }
  0xb4   : > { %v496_v50 = vmax.f32 %v442_v46, 0.0  ;;  %v504_v51 = vmax.f32 %v462_v47, 0.0 }
  0xb5   : > { %v481_v57 = vmax.f32 %v405_v52, 0.0  ;;  %v489_v58 = vmax.f32 %v425_v53, 0.0 }
  0xb6   : > { %v520_v55 = vmax.f32 %v496_v50, %v504_v51 }
  0xb7   : > { %v513_v1 = vmax.f32 %v481_v57, %v489_v58 }
  0xb8   : > { %v528_v56 = vmax.f32 %v512_v54, %v520_v55 }
  0xb9   : > { %v444_v59 = vpop.f32.mrf.mxu2  ;;  %v464_v60 = vpop.f32.mrf.mxu3 }
  0xba   : > { %536 = vst [vmem:[%s1047_s21 + $0x8] sm:$0xff] %v528_v56  ;;  %v445_v61 = vadd.f32 %v1036_v22, %v444_v59  ;;  %v465_v62 = vadd.f32 %v1036_v22, %v464_v60  ;;  %v406_v63 = vpop.f32.mrf.mxu0  ;;  %v426_v0 = vpop.f32.mrf.mxu1 }
  0xbb   : > { %v407_v5 = vadd.f32 %v1036_v22, %v406_v63  ;;  %v427_v6 = vadd.f32 %v1036_v22, %v426_v0 }
  0xbc   : > { %v497_v2 = vmax.f32 %v445_v61, 0.0  ;;  %v505_v3 = vmax.f32 %v465_v62, 0.0 }
  0xbd   : > { %v482_v10 = vmax.f32 %v407_v5, 0.0  ;;  %v490_v11 = vmax.f32 %v427_v6, 0.0 }
  0xbe   : > { %v521_v4 = vmax.f32 %v497_v2, %v505_v3 }
  0xbf   : > { %v514_v20 = vmax.f32 %v482_v10, %v490_v11 }
  0xc0   : > { %v529_v7 = vmax.f32 %v513_v1, %v521_v4 }
  0xc1   : > { %v446_v8 = vpop.f32.mrf.mxu2  ;;  %v466_v9 = vpop.f32.mrf.mxu3 }
  0xc2   : > { %537 = vst [vmem:[%s1047_s21 + $0x10] sm:$0xff] %v529_v7  ;;  %v447_v12 = vadd.f32 %v1036_v22, %v446_v8  ;;  %v467_v13 = vadd.f32 %v1036_v22, %v466_v9  ;;  %v409_v14 = vpop.f32.mrf.mxu0  ;;  %v429_v15 = vpop.f32.mrf.mxu1 }
  0xc3   : > { %v410_v18 = vadd.f32 %v1036_v22, %v409_v14  ;;  %v430_v19 = vadd.f32 %v1036_v22, %v429_v15 }
  0xc4   : > { %v498_v16 = vmax.f32 %v447_v12, 0.0  ;;  %v506_v17 = vmax.f32 %v467_v13, 0.0 }
  0xc5   : > { %v483_v24 = vmax.f32 %v410_v18, 0.0  ;;  %v491_v25 = vmax.f32 %v430_v19, 0.0 }
  0xc6   : > { %v522_v21 = vmax.f32 %v498_v16, %v506_v17 }
  0xc7   : > { %v515_v32 = vmax.f32 %v483_v24, %v491_v25 }
  0xc8   : > { %v530_v23 = vmax.f32 %v514_v20, %v522_v21 }
  0xc9   : > { %v449_v26 = vpop.f32.mrf.mxu2  ;;  %v469_v27 = vpop.f32.mrf.mxu3 }
  0xca   : > { %538 = vst [vmem:[%s1047_s21 + $0x18] sm:$0xff] %v530_v23  ;;  %v450_v28 = vadd.f32 %v1036_v22, %v449_v26  ;;  %v470_v29 = vadd.f32 %v1036_v22, %v469_v27  ;;  %v411_v30 = vpop.f32.mrf.mxu0  ;;  %v431_v31 = vpop.f32.mrf.mxu1 }
  0xcb   : > { %v412_v36 = vadd.f32 %v1036_v22, %v411_v30  ;;  %v432_v37 = vadd.f32 %v1036_v22, %v431_v31 }
  0xcc   : > { %v499_v33 = vmax.f32 %v450_v28, 0.0  ;;  %v507_v34 = vmax.f32 %v470_v29, 0.0 }
  0xcd   : > { %v484_v41 = vmax.f32 %v412_v36, 0.0  ;;  %v492_v42 = vmax.f32 %v432_v37, 0.0 }
  0xce   : > { %v523_v35 = vmax.f32 %v499_v33, %v507_v34 }
  0xcf   : > { %v516_v51 = vmax.f32 %v484_v41, %v492_v42 }
  0xd0   : > { %v531_v38 = vmax.f32 %v515_v32, %v523_v35 }
  0xd1   : > { %v451_v39 = vpop.f32.mrf.mxu2  ;;  %v471_v40 = vpop.f32.mrf.mxu3 }
  0xd2   : > { %539 = vst [vmem:[%s1047_s21 + $0x20] sm:$0xff] %v531_v38  ;;  %v452_v43 = vadd.f32 %v1036_v22, %v451_v39  ;;  %v472_v44 = vadd.f32 %v1036_v22, %v471_v40  ;;  %v414_v45 = vpop.f32.mrf.mxu0  ;;  %v434_v46 = vpop.f32.mrf.mxu1 }
  0xd3   : > { %v415_v49 = vadd.f32 %v1036_v22, %v414_v45  ;;  %v435_v50 = vadd.f32 %v1036_v22, %v434_v46 }
  0xd4   : > { %v500_v47 = vmax.f32 %v452_v43, 0.0  ;;  %v508_v48 = vmax.f32 %v472_v44, 0.0 }
  0xd5   : > { %v485_v54 = vmax.f32 %v415_v49, 0.0  ;;  %v493_v55 = vmax.f32 %v435_v50, 0.0 }
  0xd6   : > { %v524_v52 = vmax.f32 %v500_v47, %v508_v48 }
  0xd7   : > { %v517_v62 = vmax.f32 %v485_v54, %v493_v55 }
  0xd8   : > { %v532_v53 = vmax.f32 %v516_v51, %v524_v52 }
  0xd9   : > { %v454_v56 = vpop.f32.mrf.mxu2  ;;  %v474_v57 = vpop.f32.mrf.mxu3 }
  0xda   : > { %540 = vst [vmem:[%s1047_s21 + $0x28] sm:$0xff] %v532_v53  ;;  %v455_v58 = vadd.f32 %v1036_v22, %v454_v56  ;;  %v475_v59 = vadd.f32 %v1036_v22, %v474_v57  ;;  %v416_v60 = vpop.f32.mrf.mxu0  ;;  %v436_v61 = vpop.f32.mrf.mxu1 }
  0xdb   : > { %v417_v2 = vadd.f32 %v1036_v22, %v416_v60  ;;  %v437_v3 = vadd.f32 %v1036_v22, %v436_v61 }
  0xdc   : > { %v501_v63 = vmax.f32 %v455_v58, 0.0  ;;  %v509_v0 = vmax.f32 %v475_v59, 0.0 }
  0xdd   : > { %v486_v7 = vmax.f32 %v417_v2, 0.0  ;;  %v494_v8 = vmax.f32 %v437_v3, 0.0 }
  0xde   : > { %v525_v1 = vmax.f32 %v501_v63, %v509_v0 }
  0xdf   : > { %v518_v13 = vmax.f32 %v486_v7, %v494_v8 }
  0xe0   : > { %v533_v4 = vmax.f32 %v517_v62, %v525_v1 }
  0xe1   : > { %v456_v5 = vpop.f32.mrf.mxu2  ;;  %v476_v6 = vpop.f32.mrf.mxu3 }
  0xe2   : > { %541 = vst [vmem:[%s1047_s21 + $0x30] sm:$0xff] %v533_v4  ;;  %v457_v9 = vadd.f32 %v1036_v22, %v456_v5  ;;  %v477_v10 = vadd.f32 %v1036_v22, %v476_v6 }
  0xe4   : > { %v502_v11 = vmax.f32 %v457_v9, 0.0  ;;  %v510_v12 = vmax.f32 %v477_v10, 0.0 }
  0xe6   : > { %v526_v14 = vmax.f32 %v502_v11, %v510_v12 }
  0xe8   : > { %v534_v15 = vmax.f32 %v518_v13, %v526_v14 }
  0xea   : > { %542 = vst [vmem:[%s1047_s21 + $0x38] sm:$0xff] %v534_v15 }
  0xeb   : > { %855 = shalt.err (!%p852_p5)
}
  0xec   : > { %s908_s11 = smov 128   ;;  %s909_s18 = smov 8  }
  0xed   : > { %770 = dma.vmem_to_hbm [thread:$0]  (%p970_p4), %s559_s15, 1024, %s561_s29, %s544_s30, %s908_s11, %s908_s11, %s909_s18  }
  0xee PF: > { %p776_p6 = scmp.ge.s32.totalorder %s906_s17, 2  ;;  %s575_s19 = sand.u32 1, %s886_s12  }
  0xef   : > { %s576_s21 = scalar_lea.sflag [#allocation3], %s575_s19 }
  0xf0   : > { %p773_p7 = pnand %p776_p6, %p977_p8 }
  0xf2   : > { %p774_p9 = pneg %p773_p7 }
  0xf4   : > { %881 = dma.done.wait (%p774_p9), %s576_s21, 1024  }
  0xf5   : > { %883 = vsyncadd (%p774_p9), %s576_s21, 4294966272  ;;  %s16_s17 = sadd.s32 1, %s906_s17   ;;  %s1128_s12 = smov %s890_s13 }
  0xf6   : > { %p13_p10 = scmp.ge.s32.totalorder %s16_s17, 4   ;;  %s1129_s13 = smov %s894_s14 }
  0xf7   : > { %s1130_s14 = smov %s983_s25  ;;  %s1131_s15 = smov %s902_s16 }
  0xf8   : > { %s1132_s16 = smov %s1134_s20  ;;  %15 = sbr.rel (!%p13_p10) target bundleno = 4 (0x4), region = 67 }
  0xfd   :  { %582 = vsyncpa [#allocation3], 1 }
  0xfe   :  { %584 = vsyncpa [#allocation3 + $0x1], 1 }

</bundles_post_ra>
